<compile_context>
chip_gen: v5e
topology: v5e:2x2
jax: 0.10.0
libtpu: 0.0.40
codegen_flags: <defaults>
</compile_context>

<pallas_src>
import functools

import jax
import jax.numpy as jnp
from jax import lax
from jax.experimental import pallas as pl
from jax.experimental.pallas import tpu as pltpu


# ---------------------------------------------------------------------------
# Fused kernel: index_select -> BN1 -> ReLU -> grouped 1x1 conv -> shuffle ->
# BN2 -> ReLU -> grouped 3x3 conv (pad=1) -> concat with identity.
# One batch element per grid step; every intermediate stays in VMEM.
# ---------------------------------------------------------------------------
def _condense_unit_kernel(x_ref, sel_ref, ss1_ref, w1_ref, ss2_ref, w2_ref,
                          cmask_ref, out_ref, zpad_ref, *, H, W):
    M = H * W
    Cin = x_ref.shape[1]
    mid = w1_ref.shape[0]
    inc = w2_ref.shape[1]

    xv = x_ref[0]                                                   # (Cin, M) f32

    # index_select as a one-hot f32 matmul (gather never leaves VMEM).
    g = jnp.dot(sel_ref[...], xv, preferred_element_type=jnp.float32)

    # BN1 (eval, folded scale/shift) + ReLU on the VPU.
    ss1 = ss1_ref[...]
    h = jnp.maximum(g * ss1[:, 0:1] + ss1[:, 1:2], 0.0)

    # Grouped 1x1 conv as ONE block-diagonal (mid, Cin) matmul; the channel
    # shuffle is folded into the row order of w1 (zero-cost).
    u = jnp.dot(w1_ref[...], h.astype(w1_ref.dtype),
                preferred_element_type=jnp.float32)                 # (mid, M)

    # BN2 (eval) + ReLU, written straight into a zero-padded VMEM scratch:
    # row stride W, one zero pad row top & bottom, plus one corner element at
    # each end (PF = (H+2)*W + 2).  Valid pixel (y,x) sits at 1+(y+1)*W+x.
    ss2 = ss2_ref[...]
    z = jnp.maximum(u * ss2[:, 0:1] + ss2[:, 1:2], 0.0)
    zpad_ref[:, :1 + W] = jnp.zeros((mid, 1 + W), zpad_ref.dtype)
    zpad_ref[:, 1 + W + M:] = jnp.zeros((mid, W + 1), zpad_ref.dtype)
    zpad_ref[:, 1 + W:1 + W + M] = z.astype(zpad_ref.dtype)

    # Grouped 3x3 conv (pad=1): 9 lane-shifted block-diagonal (inc, mid)
    # matmuls, f32 accumulation.  Because the scratch row stride equals the
    # output row stride (W), the dx=0 / dx=2 taps wrap across rows; the two
    # small per-output-column masks zero exactly those wrapped contributions,
    # so the result is already lane-dense (inc, M).
    acc = jnp.zeros((inc, M), jnp.float32)
    for dx in range(3):
        part = None
        for dy in range(3):
            start = dy * W + dx                                     # static
            op = zpad_ref[:, start:start + M]                       # (mid, M)
            p = jnp.dot(w2_ref[3 * dy + dx], op,
                        preferred_element_type=jnp.float32)
            part = p if part is None else part + p
        if dx == 0:
            part = part * cmask_ref[0:1, :]
        elif dx == 2:
            part = part * cmask_ref[1:2, :]
        acc = acc + part

    # concat([identity, conv2_out], dim=1) folded into the output block.
    out_ref[0, :Cin, :] = xv.astype(out_ref.dtype)
    out_ref[0, Cin:Cin + inc, :] = acc.astype(out_ref.dtype)


# ---------------------------------------------------------------------------
# Wrapper: host-side parameter folding (all tiny) + the single pallas_call.
# ---------------------------------------------------------------------------
@functools.partial(jax.jit, static_argnames=("groups", "eps", "use_bf16"))
def condense_unit(x, index, bn1, w1, bn2, w2, *, groups: int,
                  eps: float = 1e-5, use_bf16: bool = True):
    N, Cin, H, W = x.shape
    mid = w1.shape[0]
    inc = w2.shape[0]
    G = groups
    M = H * W
    Cout = Cin + inc
    PF = (H + 2) * W + 2
    assert Cin % G == 0 and mid % G == 0 and inc % G == 0
    cdtype = jnp.bfloat16 if use_bf16 else jnp.float32

    g1, b1, m1, v1 = bn1
    g2, b2, m2, v2 = bn2

    # Fold BN (eval mode) into per-channel scale/shift.
    s1 = g1 / jnp.sqrt(v1 + eps)
    ss1 = jnp.stack([s1, b1 - m1 * s1], axis=-1).astype(jnp.float32)    # (Cin, 2)
    s2 = g2 / jnp.sqrt(v2 + eps)
    ss2 = jnp.stack([s2, b2 - m2 * s2], axis=-1).astype(jnp.float32)    # (mid, 2)

    # One-hot gather matrix for index_select (row i selects channel index[i]).
    sel = jax.nn.one_hot(index, Cin, dtype=jnp.float32)                 # (Cin, Cin)

    # conv1: block-diagonal (mid, Cin) weight, with the channel shuffle folded
    # into the row order: shuffled channel k = original channel (k%G)*Cog1+k//G.
    Cig1, Cog1 = Cin // G, mid // G
    w1_bd = jnp.einsum('goi,gh->gohi', w1.reshape(G, Cog1, Cig1),
                       jnp.eye(G, dtype=w1.dtype)).reshape(mid, Cin)
    k = jnp.arange(mid)
    perm = (k % G) * Cog1 + (k // G)
    w1_eff = w1_bd[perm].astype(cdtype)                                 # (mid, Cin)

    # conv2: per-tap block-diagonal (inc, mid) weights -> (9, inc, mid).
    Cig2, Cog2 = mid // G, inc // G
    w2_t = jnp.transpose(w2.reshape(G, Cog2, Cig2, 3, 3), (3, 4, 0, 1, 2))
    w2_eff = jnp.einsum('klgoi,gh->klgohi', w2_t,
                        jnp.eye(G, dtype=w2.dtype)).reshape(9, inc, mid)
    w2_eff = w2_eff.astype(cdtype)

    # Output-column masks for the +/-1 column taps (dx=0 kills x==0,
    # dx=2 kills x==W-1).
    col = jnp.arange(M, dtype=jnp.int32) % W
    cmask = jnp.stack([(col != 0), (col != W - 1)]).astype(jnp.float32)  # (2, M)

    x2 = x.reshape(N, Cin, M)                                           # free reshape

    kern = functools.partial(_condense_unit_kernel, H=H, W=W)
    out = pl.pallas_call(
        kern,
        out_shape=jax.ShapeDtypeStruct((N, Cout, M), x.dtype),
        grid_spec=pltpu.PrefetchScalarGridSpec(
            num_scalar_prefetch=0,
            grid=(N,),
            in_specs=[
                pl.BlockSpec((1, Cin, M), lambda n: (n, 0, 0)),
                pl.BlockSpec((Cin, Cin), lambda n: (0, 0)),
                pl.BlockSpec((Cin, 2), lambda n: (0, 0)),
                pl.BlockSpec((mid, Cin), lambda n: (0, 0)),
                pl.BlockSpec((mid, 2), lambda n: (0, 0)),
                pl.BlockSpec((9, inc, mid), lambda n: (0, 0, 0)),
                pl.BlockSpec((2, M), lambda n: (0, 0)),
            ],
            out_specs=pl.BlockSpec((1, Cout, M), lambda n: (n, 0, 0)),
            scratch_shapes=[pltpu.VMEM((mid, PF), cdtype)],
        ),
        compiler_params=pltpu.CompilerParams(
            dimension_semantics=("parallel",)),
    )(x2, sel, ss1, w1_eff, ss2, w2_eff, cmask)

    return out.reshape(N, Cout, H, W)                                   # free reshape


# ---------------------------------------------------------------------------
# Pure-JAX reference mirroring the PyTorch forward (eval-mode BN).
# ---------------------------------------------------------------------------
def _reference_unit(x, index, bn1, w1, bn2, w2, groups, eps=1e-5):
    g1, b1, m1, v1 = bn1
    g2, b2, m2, v2 = bn2
    hp = lax.Precision.HIGHEST

    def bn_relu(t, g, b, m, v):
        t = (t - m[None, :, None, None]) / jnp.sqrt(v[None, :, None, None] + eps)
        return jnp.maximum(t * g[None, :, None, None] + b[None, :, None, None], 0.0)

    t = jnp.take(x, index, axis=1)
    t = bn_relu(t, g1, b1, m1, v1)
    t = lax.conv_general_dilated(t, w1, (1, 1), "VALID",
                                 feature_group_count=groups,
                                 dimension_numbers=("NCHW", "OIHW", "NCHW"),
                                 precision=hp)
    N, C, H, W = t.shape
    t = t.reshape(N, groups, C // groups, H, W).transpose(0, 2, 1, 3, 4)
    t = t.reshape(N, C, H, W)                               # channel shuffle
    t = bn_relu(t, g2, b2, m2, v2)
    t = lax.conv_general_dilated(t, w2, (1, 1), ((1, 1), (1, 1)),
                                 feature_group_count=groups,
                                 dimension_numbers=("NCHW", "OIHW", "NCHW"),
                                 precision=hp)
    return jnp.concatenate([x, t], axis=1)


if __name__ == "__main__":
    # CondenseUnit(in=8, out=16, groups=2): inc=8, mid=32 (bottleneck 4x).
    N, Cin, Cout, G, H, W = 2, 8, 16, 2, 16, 16
    inc = Cout - Cin
    mid = 4 * inc

    key = jax.random.PRNGKey(0)
    keys = jax.random.split(key, 12)

    x = jax.random.normal(keys[0], (N, Cin, H, W), dtype=jnp.float32)
    # Buffer init in the module is index.fill_(0); use a non-trivial index to
    # exercise the gather path (semantics are identical for any valid content).
    index = jax.random.randint(keys[11], (Cin,), 0, Cin, dtype=jnp.int32)

    def bn_params(kg, kb, km, kv, c):
        g = 1.0 + 0.1 * jax.random.normal(kg, (c,), dtype=jnp.float32)
        b = 0.1 * jax.random.normal(kb, (c,), dtype=jnp.float32)
        m = 0.1 * jax.random.normal(km, (c,), dtype=jnp.float32)
        v = jnp.abs(1.0 + 0.1 * jax.random.normal(kv, (c,), dtype=jnp.float32))
        return (g, b, m, v)

    bn1 = bn_params(keys[1], keys[2], keys[3], keys[4], Cin)
    bn2 = bn_params(keys[5], keys[6], keys[7], keys[8], mid)

    w1 = 0.1 * jax.random.normal(keys[9], (mid, Cin // G, 1, 1), dtype=jnp.float32)
    w2 = 0.1 * jax.random.normal(keys[10], (inc, mid // G, 3, 3), dtype=jnp.float32)

    y_ref = _reference_unit(x, index, bn1, w1, bn2, w2, G)

    # f32 MXU path: tight check.
    y32 = jax.block_until_ready(
        condense_unit(x, index, bn1, w1, bn2, w2, groups=G, use_bf16=False))
    assert y32.shape == (N, Cout, H, W), y32.shape
    err32 = float(jnp.max(jnp.abs(y32 - y_ref)))
    assert jnp.allclose(y32, y_ref, rtol=2e-3, atol=2e-3), err32

    # bf16 MXU path (shipped default): looser tolerance.
    ybf = jax.block_until_ready(
        condense_unit(x, index, bn1, w1, bn2, w2, groups=G, use_bf16=True))
    assert ybf.shape == (N, Cout, H, W), ybf.shape
    errbf = float(jnp.max(jnp.abs(ybf - y_ref)))
    assert jnp.allclose(ybf, y_ref, rtol=5e-2, atol=5e-2), errbf

    print("KERNEL_OK")
</pallas_src>

<mosaic_0001>
module attributes {stable_mosaic.version = 11 : i64} {
  func.func @_condense_unit_kernel(%arg0: i32, %arg1: memref<1x8x256xf32, #tpu.memory_space<vmem>>, %arg2: memref<8x8xf32, #tpu.memory_space<vmem>>, %arg3: memref<8x2xf32, #tpu.memory_space<vmem>>, %arg4: memref<32x8xf32, #tpu.memory_space<vmem>>, %arg5: memref<32x2xf32, #tpu.memory_space<vmem>>, %arg6: memref<9x8x32xf32, #tpu.memory_space<vmem>>, %arg7: memref<2x256xf32, #tpu.memory_space<vmem>>, %arg8: memref<1x16x256xf32, #tpu.memory_space<vmem>>, %arg9: memref<32x290xf32, #tpu.memory_space<vmem>>) attributes {dimension_semantics = [#tpu.dimension_semantics<parallel>], iteration_bounds = array<i64: 2>, scalar_prefetch = 0 : i64, scratch_operands = 1 : i64, tpu.core_type = #tpu.core_type<tc>, window_params = [{transform_indices = @transform_0, window_bounds = array<i64: 1, 8, 256>}, {pipeline_mode = #tpu.pipeline_mode<synchronous>, transform_indices = @transform_1, window_bounds = array<i64: 8, 8>}, {pipeline_mode = #tpu.pipeline_mode<synchronous>, transform_indices = @transform_2, window_bounds = array<i64: 8, 2>}, {pipeline_mode = #tpu.pipeline_mode<synchronous>, transform_indices = @transform_3, window_bounds = array<i64: 32, 8>}, {pipeline_mode = #tpu.pipeline_mode<synchronous>, transform_indices = @transform_4, window_bounds = array<i64: 32, 2>}, {pipeline_mode = #tpu.pipeline_mode<synchronous>, transform_indices = @transform_5, window_bounds = array<i64: 9, 8, 32>}, {pipeline_mode = #tpu.pipeline_mode<synchronous>, transform_indices = @transform_6, window_bounds = array<i64: 2, 256>}, {transform_indices = @transform_7, window_bounds = array<i64: 1, 16, 256>}]} {
    %c0 = arith.constant 0 : index
    %c0_0 = arith.constant 0 : index
    %c0_1 = arith.constant 0 : index
    %0 = vector.load %arg1[%c0, %c0_0, %c0_1] : memref<1x8x256xf32, #tpu.memory_space<vmem>>, vector<1x8x256xf32>
    %1 = vector.shape_cast %0 : vector<1x8x256xf32> to vector<8x256xf32>
    %c0_2 = arith.constant 0 : index
    %c0_3 = arith.constant 0 : index
    %2 = vector.load %arg2[%c0_2, %c0_3] : memref<8x8xf32, #tpu.memory_space<vmem>>, vector<8x8xf32>
    %cst = arith.constant dense<0.000000e+00> : vector<8x256xf32>
    %3 = tpu.matmul %2, %1, %cst {dimension_numbers = #tpu.dot_dimension_numbers<[1], [0], [0], [1], [0, 0, 1, 1], [], []>} : vector<8x8xf32>, vector<8x256xf32>, vector<8x256xf32> -> vector<8x256xf32>
    %c0_4 = arith.constant 0 : index
    %c0_5 = arith.constant 0 : index
    %4 = vector.load %arg3[%c0_4, %c0_5] : memref<8x2xf32, #tpu.memory_space<vmem>>, vector<8x2xf32>
    %5 = vector.extract_strided_slice %4 {offsets = [0, 0], sizes = [8, 1], strides = [1, 1]} : vector<8x2xf32> to vector<8x1xf32>
    %6 = vector.broadcast %5 : vector<8x1xf32> to vector<8x256xf32>
    %7 = arith.mulf %3, %6 : vector<8x256xf32>
    %8 = vector.extract_strided_slice %4 {offsets = [0, 1], sizes = [8, 1], strides = [1, 1]} : vector<8x2xf32> to vector<8x1xf32>
    %9 = vector.broadcast %8 : vector<8x1xf32> to vector<8x256xf32>
    %10 = arith.addf %7, %9 : vector<8x256xf32>
    %cst_6 = arith.constant 0.000000e+00 : f32
    %11 = vector.broadcast %cst_6 : f32 to vector<8x256xf32>
    %12 = arith.maximumf %10, %11 : vector<8x256xf32>
    %c0_7 = arith.constant 0 : index
    %c0_8 = arith.constant 0 : index
    %13 = vector.load %arg4[%c0_7, %c0_8] : memref<32x8xf32, #tpu.memory_space<vmem>>, vector<32x8xf32>
    %cst_9 = arith.constant dense<0.000000e+00> : vector<32x256xf32>
    %14 = tpu.matmul %13, %12, %cst_9 {dimension_numbers = #tpu.dot_dimension_numbers<[1], [0], [0], [1], [0, 0, 1, 1], [], []>} : vector<32x8xf32>, vector<8x256xf32>, vector<32x256xf32> -> vector<32x256xf32>
    %c0_10 = arith.constant 0 : index
    %c0_11 = arith.constant 0 : index
    %15 = vector.load %arg5[%c0_10, %c0_11] : memref<32x2xf32, #tpu.memory_space<vmem>>, vector<32x2xf32>
    %16 = vector.extract_strided_slice %15 {offsets = [0, 0], sizes = [32, 1], strides = [1, 1]} : vector<32x2xf32> to vector<32x1xf32>
    %17 = vector.broadcast %16 : vector<32x1xf32> to vector<32x256xf32>
    %18 = arith.mulf %14, %17 : vector<32x256xf32>
    %19 = vector.extract_strided_slice %15 {offsets = [0, 1], sizes = [32, 1], strides = [1, 1]} : vector<32x2xf32> to vector<32x1xf32>
    %20 = vector.broadcast %19 : vector<32x1xf32> to vector<32x256xf32>
    %21 = arith.addf %18, %20 : vector<32x256xf32>
    %cst_12 = arith.constant 0.000000e+00 : f32
    %22 = vector.broadcast %cst_12 : f32 to vector<32x256xf32>
    %23 = arith.maximumf %21, %22 : vector<32x256xf32>
    %cst_13 = arith.constant 0.000000e+00 : f32
    %24 = vector.broadcast %cst_13 : f32 to vector<32x17xf32>
    %c0_14 = arith.constant 0 : index
    %c0_15 = arith.constant 0 : index
    %25 = vector.load %arg9[%c0_14, %c0_15] : memref<32x290xf32, #tpu.memory_space<vmem>>, vector<32x17xf32>
    tpu.vector_store %arg9[%c0_14, %c0_15], %24 {strides = array<i32>} : memref<32x290xf32, #tpu.memory_space<vmem>>, vector<32x17xf32>,
    %cst_16 = arith.constant 0.000000e+00 : f32
    %26 = vector.broadcast %cst_16 : f32 to vector<32x17xf32>
    %c0_17 = arith.constant 0 : index
    %c273 = arith.constant 273 : index
    %27 = vector.load %arg9[%c0_17, %c273] : memref<32x290xf32, #tpu.memory_space<vmem>>, vector<32x17xf32>
    tpu.vector_store %arg9[%c0_17, %c273], %26 {strides = array<i32>} : memref<32x290xf32, #tpu.memory_space<vmem>>, vector<32x17xf32>,
    %c0_18 = arith.constant 0 : index
    %c17 = arith.constant 17 : index
    %28 = vector.load %arg9[%c0_18, %c17] : memref<32x290xf32, #tpu.memory_space<vmem>>, vector<32x256xf32>
    tpu.vector_store %arg9[%c0_18, %c17], %23 {strides = array<i32>} : memref<32x290xf32, #tpu.memory_space<vmem>>, vector<32x256xf32>,
    %cst_19 = arith.constant 0.000000e+00 : f32
    %29 = vector.broadcast %cst_19 : f32 to vector<8x256xf32>
    %c0_20 = arith.constant 0 : index
    %c0_21 = arith.constant 0 : index
    %30 = vector.load %arg9[%c0_20, %c0_21] : memref<32x290xf32, #tpu.memory_space<vmem>>, vector<32x256xf32>
    %c0_22 = arith.constant 0 : index
    %c0_23 = arith.constant 0 : index
    %c0_24 = arith.constant 0 : index
    %31 = vector.load %arg6[%c0_22, %c0_23, %c0_24] : memref<9x8x32xf32, #tpu.memory_space<vmem>>, vector<1x8x32xf32>
    %32 = vector.shape_cast %31 : vector<1x8x32xf32> to vector<8x32xf32>
    %cst_25 = arith.constant dense<0.000000e+00> : vector<8x256xf32>
    %33 = tpu.matmul %32, %30, %cst_25 {dimension_numbers = #tpu.dot_dimension_numbers<[1], [0], [0], [1], [0, 0, 1, 1], [], []>} : vector<8x32xf32>, vector<32x256xf32>, vector<8x256xf32> -> vector<8x256xf32>
    %c0_26 = arith.constant 0 : index
    %c16 = arith.constant 16 : index
    %34 = vector.load %arg9[%c0_26, %c16] : memref<32x290xf32, #tpu.memory_space<vmem>>, vector<32x256xf32>
    %c3 = arith.constant 3 : index
    %c0_27 = arith.constant 0 : index
    %c0_28 = arith.constant 0 : index
    %35 = vector.load %arg6[%c3, %c0_27, %c0_28] : memref<9x8x32xf32, #tpu.memory_space<vmem>>, vector<1x8x32xf32>
    %36 = vector.shape_cast %35 : vector<1x8x32xf32> to vector<8x32xf32>
    %cst_29 = arith.constant dense<0.000000e+00> : vector<8x256xf32>
    %37 = tpu.matmul %36, %34, %cst_29 {dimension_numbers = #tpu.dot_dimension_numbers<[1], [0], [0], [1], [0, 0, 1, 1], [], []>} : vector<8x32xf32>, vector<32x256xf32>, vector<8x256xf32> -> vector<8x256xf32>
    %38 = arith.addf %33, %37 : vector<8x256xf32>
    %c0_30 = arith.constant 0 : index
    %c32 = arith.constant 32 : index
    %39 = vector.load %arg9[%c0_30, %c32] : memref<32x290xf32, #tpu.memory_space<vmem>>, vector<32x256xf32>
    %c6 = arith.constant 6 : index
    %c0_31 = arith.constant 0 : index
    %c0_32 = arith.constant 0 : index
    %40 = vector.load %arg6[%c6, %c0_31, %c0_32] : memref<9x8x32xf32, #tpu.memory_space<vmem>>, vector<1x8x32xf32>
    %41 = vector.shape_cast %40 : vector<1x8x32xf32> to vector<8x32xf32>
    %cst_33 = arith.constant dense<0.000000e+00> : vector<8x256xf32>
    %42 = tpu.matmul %41, %39, %cst_33 {dimension_numbers = #tpu.dot_dimension_numbers<[1], [0], [0], [1], [0, 0, 1, 1], [], []>} : vector<8x32xf32>, vector<32x256xf32>, vector<8x256xf32> -> vector<8x256xf32>
    %43 = arith.addf %38, %42 : vector<8x256xf32>
    %c0_34 = arith.constant 0 : index
    %c0_35 = arith.constant 0 : index
    %44 = vector.load %arg7[%c0_34, %c0_35] : memref<2x256xf32, #tpu.memory_space<vmem>>, vector<1x256xf32>
    %45 = vector.broadcast %44 : vector<1x256xf32> to vector<8x256xf32>
    %46 = arith.mulf %43, %45 : vector<8x256xf32>
    %47 = arith.addf %29, %46 : vector<8x256xf32>
    %c0_36 = arith.constant 0 : index
    %c1 = arith.constant 1 : index
    %48 = vector.load %arg9[%c0_36, %c1] : memref<32x290xf32, #tpu.memory_space<vmem>>, vector<32x256xf32>
    %c1_37 = arith.constant 1 : index
    %c0_38 = arith.constant 0 : index
    %c0_39 = arith.constant 0 : index
    %49 = vector.load %arg6[%c1_37, %c0_38, %c0_39] : memref<9x8x32xf32, #tpu.memory_space<vmem>>, vector<1x8x32xf32>
    %50 = vector.shape_cast %49 : vector<1x8x32xf32> to vector<8x32xf32>
    %cst_40 = arith.constant dense<0.000000e+00> : vector<8x256xf32>
    %51 = tpu.matmul %50, %48, %cst_40 {dimension_numbers = #tpu.dot_dimension_numbers<[1], [0], [0], [1], [0, 0, 1, 1], [], []>} : vector<8x32xf32>, vector<32x256xf32>, vector<8x256xf32> -> vector<8x256xf32>
    %c0_41 = arith.constant 0 : index
    %c17_42 = arith.constant 17 : index
    %52 = vector.load %arg9[%c0_41, %c17_42] : memref<32x290xf32, #tpu.memory_space<vmem>>, vector<32x256xf32>
    %c4 = arith.constant 4 : index
    %c0_43 = arith.constant 0 : index
    %c0_44 = arith.constant 0 : index
    %53 = vector.load %arg6[%c4, %c0_43, %c0_44] : memref<9x8x32xf32, #tpu.memory_space<vmem>>, vector<1x8x32xf32>
    %54 = vector.shape_cast %53 : vector<1x8x32xf32> to vector<8x32xf32>
    %cst_45 = arith.constant dense<0.000000e+00> : vector<8x256xf32>
    %55 = tpu.matmul %54, %52, %cst_45 {dimension_numbers = #tpu.dot_dimension_numbers<[1], [0], [0], [1], [0, 0, 1, 1], [], []>} : vector<8x32xf32>, vector<32x256xf32>, vector<8x256xf32> -> vector<8x256xf32>
    %56 = arith.addf %51, %55 : vector<8x256xf32>
    %c0_46 = arith.constant 0 : index
    %c33 = arith.constant 33 : index
    %57 = vector.load %arg9[%c0_46, %c33] : memref<32x290xf32, #tpu.memory_space<vmem>>, vector<32x256xf32>
    %c7 = arith.constant 7 : index
    %c0_47 = arith.constant 0 : index
    %c0_48 = arith.constant 0 : index
    %58 = vector.load %arg6[%c7, %c0_47, %c0_48] : memref<9x8x32xf32, #tpu.memory_space<vmem>>, vector<1x8x32xf32>
    %59 = vector.shape_cast %58 : vector<1x8x32xf32> to vector<8x32xf32>
    %cst_49 = arith.constant dense<0.000000e+00> : vector<8x256xf32>
    %60 = tpu.matmul %59, %57, %cst_49 {dimension_numbers = #tpu.dot_dimension_numbers<[1], [0], [0], [1], [0, 0, 1, 1], [], []>} : vector<8x32xf32>, vector<32x256xf32>, vector<8x256xf32> -> vector<8x256xf32>
    %61 = arith.addf %56, %60 : vector<8x256xf32>
    %62 = arith.addf %47, %61 : vector<8x256xf32>
    %c0_50 = arith.constant 0 : index
    %c2 = arith.constant 2 : index
    %63 = vector.load %arg9[%c0_50, %c2] : memref<32x290xf32, #tpu.memory_space<vmem>>, vector<32x256xf32>
    %c2_51 = arith.constant 2 : index
    %c0_52 = arith.constant 0 : index
    %c0_53 = arith.constant 0 : index
    %64 = vector.load %arg6[%c2_51, %c0_52, %c0_53] : memref<9x8x32xf32, #tpu.memory_space<vmem>>, vector<1x8x32xf32>
    %65 = vector.shape_cast %64 : vector<1x8x32xf32> to vector<8x32xf32>
    %cst_54 = arith.constant dense<0.000000e+00> : vector<8x256xf32>
    %66 = tpu.matmul %65, %63, %cst_54 {dimension_numbers = #tpu.dot_dimension_numbers<[1], [0], [0], [1], [0, 0, 1, 1], [], []>} : vector<8x32xf32>, vector<32x256xf32>, vector<8x256xf32> -> vector<8x256xf32>
    %c0_55 = arith.constant 0 : index
    %c18 = arith.constant 18 : index
    %67 = vector.load %arg9[%c0_55, %c18] : memref<32x290xf32, #tpu.memory_space<vmem>>, vector<32x256xf32>
    %c5 = arith.constant 5 : index
    %c0_56 = arith.constant 0 : index
    %c0_57 = arith.constant 0 : index
    %68 = vector.load %arg6[%c5, %c0_56, %c0_57] : memref<9x8x32xf32, #tpu.memory_space<vmem>>, vector<1x8x32xf32>
    %69 = vector.shape_cast %68 : vector<1x8x32xf32> to vector<8x32xf32>
    %cst_58 = arith.constant dense<0.000000e+00> : vector<8x256xf32>
    %70 = tpu.matmul %69, %67, %cst_58 {dimension_numbers = #tpu.dot_dimension_numbers<[1], [0], [0], [1], [0, 0, 1, 1], [], []>} : vector<8x32xf32>, vector<32x256xf32>, vector<8x256xf32> -> vector<8x256xf32>
    %71 = arith.addf %66, %70 : vector<8x256xf32>
    %c0_59 = arith.constant 0 : index
    %c34 = arith.constant 34 : index
    %72 = vector.load %arg9[%c0_59, %c34] : memref<32x290xf32, #tpu.memory_space<vmem>>, vector<32x256xf32>
    %c8 = arith.constant 8 : index
    %c0_60 = arith.constant 0 : index
    %c0_61 = arith.constant 0 : index
    %73 = vector.load %arg6[%c8, %c0_60, %c0_61] : memref<9x8x32xf32, #tpu.memory_space<vmem>>, vector<1x8x32xf32>
    %74 = vector.shape_cast %73 : vector<1x8x32xf32> to vector<8x32xf32>
    %cst_62 = arith.constant dense<0.000000e+00> : vector<8x256xf32>
    %75 = tpu.matmul %74, %72, %cst_62 {dimension_numbers = #tpu.dot_dimension_numbers<[1], [0], [0], [1], [0, 0, 1, 1], [], []>} : vector<8x32xf32>, vector<32x256xf32>, vector<8x256xf32> -> vector<8x256xf32>
    %76 = arith.addf %71, %75 : vector<8x256xf32>
    %c1_63 = arith.constant 1 : index
    %c0_64 = arith.constant 0 : index
    %77 = vector.load %arg7[%c1_63, %c0_64] : memref<2x256xf32, #tpu.memory_space<vmem>>, vector<1x256xf32>
    %78 = vector.broadcast %77 : vector<1x256xf32> to vector<8x256xf32>
    %79 = arith.mulf %76, %78 : vector<8x256xf32>
    %80 = arith.addf %62, %79 : vector<8x256xf32>
    %c0_65 = arith.constant 0 : index
    %c0_66 = arith.constant 0 : index
    %c0_67 = arith.constant 0 : index
    %81 = vector.load %arg8[%c0_65, %c0_66, %c0_67] : memref<1x16x256xf32, #tpu.memory_space<vmem>>, vector<1x8x256xf32>
    %82 = vector.shape_cast %81 : vector<1x8x256xf32> to vector<8x256xf32>
    %83 = vector.shape_cast %1 : vector<8x256xf32> to vector<1x8x256xf32>
    tpu.vector_store %arg8[%c0_65, %c0_66, %c0_67], %83 {strides = array<i32>} : memref<1x16x256xf32, #tpu.memory_space<vmem>>, vector<1x8x256xf32>,
    %c0_68 = arith.constant 0 : index
    %c8_69 = arith.constant 8 : index
    %c0_70 = arith.constant 0 : index
    %84 = vector.load %arg8[%c0_68, %c8_69, %c0_70] : memref<1x16x256xf32, #tpu.memory_space<vmem>>, vector<1x8x256xf32>
    %85 = vector.shape_cast %84 : vector<1x8x256xf32> to vector<8x256xf32>
    %86 = vector.shape_cast %80 : vector<8x256xf32> to vector<1x8x256xf32>
    tpu.vector_store %arg8[%c0_68, %c8_69, %c0_70], %86 {strides = array<i32>} : memref<1x16x256xf32, #tpu.memory_space<vmem>>, vector<1x8x256xf32>,
    return
  }
  func.func @transform_0(%arg0: i32) -> (i32, i32, i32) {
    %c0_i32 = arith.constant 0 : i32
    %c0_i32_0 = arith.constant 0 : i32
    %c0_i32_1 = arith.constant 0 : i32
    return %arg0, %c0_i32, %c0_i32_0 : i32, i32, i32
  }
  func.func @transform_1(%arg0: i32) -> (i32, i32) {
    %c0_i32 = arith.constant 0 : i32
    %c0_i32_0 = arith.constant 0 : i32
    %c0_i32_1 = arith.constant 0 : i32
    return %c0_i32, %c0_i32_0 : i32, i32
  }
  func.func @transform_2(%arg0: i32) -> (i32, i32) {
    %c0_i32 = arith.constant 0 : i32
    %c0_i32_0 = arith.constant 0 : i32
    %c0_i32_1 = arith.constant 0 : i32
    return %c0_i32, %c0_i32_0 : i32, i32
  }
  func.func @transform_3(%arg0: i32) -> (i32, i32) {
    %c0_i32 = arith.constant 0 : i32
    %c0_i32_0 = arith.constant 0 : i32
    %c0_i32_1 = arith.constant 0 : i32
    return %c0_i32, %c0_i32_0 : i32, i32
  }
  func.func @transform_4(%arg0: i32) -> (i32, i32) {
    %c0_i32 = arith.constant 0 : i32
    %c0_i32_0 = arith.constant 0 : i32
    %c0_i32_1 = arith.constant 0 : i32
    return %c0_i32, %c0_i32_0 : i32, i32
  }
  func.func @transform_5(%arg0: i32) -> (i32, i32, i32) {
    %c0_i32 = arith.constant 0 : i32
    %c0_i32_0 = arith.constant 0 : i32
    %c0_i32_1 = arith.constant 0 : i32
    %c0_i32_2 = arith.constant 0 : i32
    return %c0_i32, %c0_i32_0, %c0_i32_1 : i32, i32, i32
  }
  func.func @transform_6(%arg0: i32) -> (i32, i32) {
    %c0_i32 = arith.constant 0 : i32
    %c0_i32_0 = arith.constant 0 : i32
    %c0_i32_1 = arith.constant 0 : i32
    return %c0_i32, %c0_i32_0 : i32, i32
  }
  func.func @transform_7(%arg0: i32) -> (i32, i32, i32) {
    %c0_i32 = arith.constant 0 : i32
    %c0_i32_0 = arith.constant 0 : i32
    %c0_i32_1 = arith.constant 0 : i32
    return %arg0, %c0_i32, %c0_i32_0 : i32, i32, i32
  }
}

</mosaic_0001>

<bundles_post_ra>
// kernel: condense_unit.1
= control target key start
LH: loop header
LB: loop body
LE: loop exit
PB: predicated region body
PF: predicated region fallthrough
CT: control target
= control target key end

     0   :  { %s1764_s24 = smov 0   ;;  %s2237_s0 = inlined_call_operand.vmem [shape: f32[2,8,256], index: 0, kind: input, shape index: {}]   ;;  %s2238_s1 = inlined_call_operand.vmem [shape: f32[8,8], index: 1, kind: input, shape index: {}]   ;;  %s2239_s2 = inlined_call_operand.vmem [shape: f32[8,2], index: 2, kind: input, shape index: {}]   ;;  %s2240_s3 = inlined_call_operand.vmem [shape: f32[32,8], index: 3, kind: input, shape index: {}]   ;;  %s2241_s4 = inlined_call_operand.vmem [shape: f32[32,2], index: 4, kind: input, shape index: {}]   ;;  %s2242_s5 = inlined_call_operand.vmem [shape: f32[9,8,32], index: 5, kind: input, shape index: {}]   ;;  %s2243_s6 = inlined_call_operand.vmem [shape: f32[2,256], index: 6, kind: input, shape index: {}]   ;;  %s2244_s7 = inlined_call_operand.vmem [shape: f32[2,16,256], index: 7, kind: output, shape index: {}]  }
   0x1 LB: > { %s1388_s25 = sadd.s32 4294967295, %s1710_s24   ;;  %p1392_p0 = scmp.ge.s32.totalorder %s1710_s24, 1  ;;  %s1710_s24 = sphi %s1764_s24, %s17_s24  }
   0x2   : > { %p237_p1 = scmp.lt.s32.totalorder %s1710_s24, 3 }
   0x4   : > { %p238_p2 = pnand %p1392_p0, %p237_p1 }
   0x5   : > { %p269_p3 = scmp.lt.s32.totalorder (!%p238_p2), %s1388_s25, 1  ;;  %s1715_s9 = smov (!%p238_p2), 17  }
   0x6   : > { %241 = sbr.rel (%p238_p2) target bundleno = 787 (0x313), region = 48  ;;  %s1716_s10 = smov (!%p238_p2), 112  }
   0x7   : > { %s1718_s12 = smov (!%p238_p2), 95   ;;  %s1719_s13 = smov (!%p238_p2), 96  }
   0x8   : > { %s1720_s15 = smov (!%p238_p2), 110   ;;  %s1721_s16 = smov (!%p238_p2), 111  }
   0x9   : > { %s1722_s17 = smov (!%p238_p2), 94   ;;  %s1723_s18 = smov (!%p238_p2), 126  }
   0xb   : > { %v326_v0 = vld [vmem:[%s2239_s2] sm:$0xff]  ;;  %v1712_v1 = vmov 0   ;;  %s2258_s25 = smov (!%p269_p3, %s1388_s25), 1  ;;  %v418_v2 = vld [vmem:[%s2241_s4 + $0x10] sm:$0xff]  ;;  %vm282_vm0 = vcmask 64512   ;;  %v1713_v6 = vmov 1  }
   0xc   : > { %1458 = vset.pattern.permute.xlu0 %v1712_v1  ;;  %1460 = vset.pattern.permute.xlu1 %v1712_v1  ;;  %s1436_s30 = sshll.u32 %s2258_s25, 4  ;;  %s1437_s8 = sshll.u32 %s2258_s25, 5  ;;  %v281_v3 = vld [vmem:[%s2238_s1] sm:$0xff]  ;;  %v417_v8 = vld [vmem:[%s2241_s4 + $0x8] sm:$0xff]  ;;  %v419_v10 = vld [vmem:[%s2241_s4 + $0x18] sm:$0xff]  ;;  %vm480_vm1 = vcmask 138240  }
   0xd   : > { %329 = vperm.xlu0 %1458, %v326_v0   ;;  %1461 = vset.pattern.permute.xlu2 %v1712_v1  ;;  %s273_s11 = scalar_lea.vmem %s2237_s0, %s1436_s30  ;;  %s1784_s14 = scalar_lea.vmem %s2244_s7, %s1437_s8  ;;  %v416_v7 = vld [vmem:[%s2241_s4] sm:$0xff]  ;;  %v343_v21 = vld [vmem:[%s2240_s3 + $0x8] sm:$0xff]  ;;  %v344_v22 = vld [vmem:[%s2240_s3 + $0x10] sm:$0xff]  ;;  %v1714_v30 = vmov 0.0   ;;  %vm485_vm2 = vcmask 277640   ;;  %vm530_vm3 = vcmask 1047688  }
   0xe   : > { %432 = vperm.xlu2 %1461, %v418_v2   ;;  %v279_v4 = vld [vmem:[%s273_s11] sm:$0xff]  ;;  %v280_v5 = vld [vmem:[%s273_s11 + $0x8] sm:$0xff]  ;;  %422 = vperm.xlu1 %1460, %v416_v7   ;;  %v345_v23 = vld [vmem:[%s2240_s3 + $0x18] sm:$0xff]  ;;  %481 = vst.msk [vmem:[#allocation2] sm:$0xff] %vm480_vm1, %v1714_v30  ;;  %s1717_s11 = smov 127   ;;  %vm594_vm4 = vcmask 916480  }
   0xf   : > { %301 = vmatpush.msra.mxu0 %v279_v4  ;;  %1329 = vst [vmem:[%s1784_s14] sm:$0xff] %v279_v4  ;;  %321 = vmatpush.msra.mxu1 %v280_v5  ;;  %v342_v20 = vld [vmem:[%s2240_s3] sm:$0xff]  ;;  %vm724_vm5 = vcmask 785408   ;;  %vm824_vm6 = vcmask 908288   ;;  %vm994_vm7 = vcmask 777216   ;;  %vm908_vm8 = vcmask 1039360  }
  0x10   : > { %1330 = vst [vmem:[%s1784_s14 + $0x8] sm:$0xff] %v280_v5  ;;  %1397 = vmatmul.msk.f32.vlgmr.msra.gmra.mxu0 %vm282_vm0, %v281_v3  ;;  %1398 = vmatmul.msk.f32.vlgmr.msra.gmra.mxu1 %vm282_vm0, %v281_v3  ;;  %vm1086_vm9 = vcmask 900096   ;;  %vm611_vm10 = vcmask 261120   ;;  %vm1256_vm11 = vcmask 769024   ;;  %vm1170_vm12 = vcmask 1031168  }
  0x11   : > { %482 = vst.msk [vmem:[#allocation2 + $0x18] sm:$0xff] %vm480_vm1, %v1714_v30 }
  0x12   : > { %483 = vst.msk [vmem:[#allocation2 + $0x30] sm:$0xff] %vm480_vm1, %v1714_v30 }
  0x13   : > { %484 = vst.msk [vmem:[#allocation2 + $0x48] sm:$0xff] %vm480_vm1, %v1714_v30 }
  0x14   : > { %487 = vst.msk [vmem:[#allocation2 + $0x28] sm:$0xff] %vm485_vm2, %v1714_v30 }
  0x15   : > { %1459 = vset.pattern.permute.xlu0 %v1713_v6  ;;  %486 = vst.msk [vmem:[#allocation2 + $0x10] sm:$0xff] %vm485_vm2, %v1714_v30 }
  0x16   : > { %335 = vperm.xlu0 %1459, %v326_v0   ;;  %427 = vperm.xlu1 %1460, %v417_v8   ;;  %488 = vst.msk [vmem:[#allocation2 + $0x40] sm:$0xff] %vm485_vm2, %v1714_v30 }
  0x17   : > { %437 = vperm.xlu2 %1461, %v419_v10   ;;  %489 = vst.msk [vmem:[#allocation2 + $0x58] sm:$0xff] %vm485_vm2, %v1714_v30 }
  0x1e   : > { %457 = vperm.xlu0 %1459, %v418_v2   ;;  %1462 = vset.pattern.permute.xlu1 %v1713_v6 }
  0x1f   : > { %449 = vperm.xlu1 %1462, %v416_v7   ;;  %1463 = vset.pattern.permute.xlu2 %v1713_v6 }
  0x20   : > { %453 = vperm.xlu2 %1463, %v417_v8  }
  0x27   : > { %461 = vperm.xlu1 %1462, %v419_v10  }
  0x68   : > { %v433_v25 = vpop.permute.xlu2 %432 }
  0x71   : > { %v438_v27 = vpop.permute.xlu2 %437 }
  0x7a   : > { %v454_v38 = vpop.permute.xlu2 %453 }
  0x7f   : > { %v330_v9 = vpop.permute.xlu0 %329 }
  0x80   : > { %v423_v24 = vpop.permute.xlu1 %422 }
  0x88   : > { %v336_v15 = vpop.permute.xlu0 %335  ;;  %v428_v26 = vpop.permute.xlu1 %427 }
  0x8d   : > { %v303_v11 = vpop.f32.mrf.mxu0  ;;  %v323_v12 = vpop.f32.mrf.mxu1 }
  0x8e   : > { %v332_v13 = vmul.f32 %v330_v9, %v303_v11  ;;  %v333_v14 = vmul.f32 %v330_v9, %v323_v12 }
  0x90   : > { %v338_v16 = vadd.f32 %v336_v15, %v332_v13  ;;  %v339_v17 = vadd.f32 %v336_v15, %v333_v14  ;;  %v458_v51 = vpop.permute.xlu0 %457 }
  0x91   : > { %v450_v33 = vpop.permute.xlu1 %449 }
  0x92   : > { %v340_v18 = vmax.f32 %v338_v16, 0.0  ;;  %v341_v19 = vmax.f32 %v339_v17, 0.0 }
  0x94   : > { %373 = vmatpush.msra.mxu2 %v340_v18  ;;  %402 = vmatpush.msra.mxu3 %v341_v19 }
  0x95   : > { %1399 = vmatmul.msk.f32.vlgmr.msra.gmra.mxu2 %vm282_vm0, %v342_v20  ;;  %1403 = vmatmul.msk.f32.vlgmr.msra.gmra.mxu3 %vm282_vm0, %v342_v20 }
  0x99   : > { %v462_v60 = vpop.permute.xlu1 %461 }
  0x9d   : > { %1400 = vmatmul.msk.f32.gmra.mxu2 %vm282_vm0, %v343_v21  ;;  %1404 = vmatmul.msk.f32.gmra.mxu3 %vm282_vm0, %v343_v21 }
  0xa5   : > { %1401 = vmatmul.msk.f32.gmra.mxu2 %vm282_vm0, %v344_v22  ;;  %1405 = vmatmul.msk.f32.gmra.mxu3 %vm282_vm0, %v344_v22 }
  0xad   : > { %1402 = vmatmul.msk.f32.gmra.mxu2 %vm282_vm0, %v345_v23  ;;  %1406 = vmatmul.msk.f32.gmra.mxu3 %vm282_vm0, %v345_v23 }
 0x118   : > { %v375_v28 = vpop.f32.mrf.mxu2  ;;  %v404_v29 = vpop.f32.mrf.mxu3 }
 0x119   : > { %v440_v31 = vmul.f32 %v423_v24, %v375_v28  ;;  %v441_v32 = vmul.f32 %v423_v24, %v404_v29 }
 0x11b   : > { %v464_v34 = vadd.f32 %v450_v33, %v440_v31  ;;  %v465_v35 = vadd.f32 %v450_v33, %v441_v32 }
 0x11d   : > { %v472_v36 = vmax.f32 %v464_v34, 0.0  ;;  %v473_v37 = vmax.f32 %v465_v35, 0.0 }
 0x11f   : > { %500 = vrot.lane.b32.xlu0 %v473_v37, %s1715_s9  ;;  %498 = vrot.lane.b32.xlu2 %v472_v36, %s1715_s9 }
 0x120   : > { %v378_v39 = vpop.f32.mrf.mxu2  ;;  %v407_v40 = vpop.f32.mrf.mxu3 }
 0x121   : > { %v442_v41 = vmul.f32 %v428_v26, %v378_v39  ;;  %v443_v42 = vmul.f32 %v428_v26, %v407_v40 }
 0x123   : > { %v466_v43 = vadd.f32 %v454_v38, %v442_v41  ;;  %v467_v44 = vadd.f32 %v454_v38, %v443_v42 }
 0x125   : > { %v474_v45 = vmax.f32 %v466_v43, 0.0  ;;  %v475_v46 = vmax.f32 %v467_v44, 0.0 }
 0x127   : > { %504 = vrot.lane.b32.xlu2 %v475_v46, %s1715_s9  ;;  %502 = vrot.lane.b32.xlu1 %v474_v45, %s1715_s9 }
 0x128   : > { %v381_v47 = vpop.f32.mrf.mxu2  ;;  %v410_v48 = vpop.f32.mrf.mxu3 }
 0x129   : > { %v444_v49 = vmul.f32 %v433_v25, %v381_v47  ;;  %v445_v50 = vmul.f32 %v433_v25, %v410_v48 }
 0x12b   : > { %v468_v52 = vadd.f32 %v458_v51, %v444_v49  ;;  %v469_v53 = vadd.f32 %v458_v51, %v445_v50 }
 0x12d   : > { %v476_v54 = vmax.f32 %v468_v52, 0.0  ;;  %v477_v55 = vmax.f32 %v469_v53, 0.0 }
 0x12f   : > { %508 = vrot.lane.b32.xlu1 %v477_v55, %s1715_s9  ;;  %506 = vrot.lane.b32.xlu0 %v476_v54, %s1715_s9 }
 0x130   : > { %v384_v56 = vpop.f32.mrf.mxu2  ;;  %v413_v57 = vpop.f32.mrf.mxu3 }
 0x131   : > { %v446_v58 = vmul.f32 %v438_v27, %v384_v56  ;;  %v447_v59 = vmul.f32 %v438_v27, %v413_v57 }
 0x133   : > { %v470_v61 = vadd.f32 %v462_v60, %v446_v58  ;;  %v471_v62 = vadd.f32 %v462_v60, %v447_v59 }
 0x135   : > { %v478_v63 = vmax.f32 %v470_v61, 0.0  ;;  %v479_v0 = vmax.f32 %v471_v62, 0.0 }
 0x137   : > { %512 = vrot.lane.b32.xlu0 %v479_v0, %s1715_s9  ;;  %510 = vrot.lane.b32.xlu2 %v478_v63, %s1715_s9 }
 0x179   : > { %v499_v1 = vpop.permute.xlu2 %498 }
 0x17a   : > { %531 = vst.msk [vmem:[#allocation2] sm:$0xff] %vm530_vm3, %v499_v1 }
 0x181   : > { %v505_v2 = vpop.permute.xlu2 %504  ;;  %v1840_v6 = vld [vmem:[#allocation2] sm:$0xff] }
 0x182   : > { %536 = vst.msk [vmem:[#allocation2 + $0x28] sm:$0xff] %vm480_vm1, %v505_v2 }
 0x189   : > { %v553_v17 = vld [vmem:[#allocation2 + $0x28] sm:$0xff] }
 0x18a   : > { %v1875_v20 = vpack.i.bf16 %v1840_v6, %v553_v17 }
 0x191   : > { %v501_v3 = vpop.permute.xlu0 %500  ;;  %v511_v4 = vpop.permute.xlu2 %510 }
 0x192   : > { %v1837_v5 = vsel %vm480_vm1, %v499_v1, %v501_v3  ;;  %533 = vst.msk [vmem:[#allocation2 + $0x10] sm:$0xff] %vm480_vm1, %v501_v3 }
 0x193   : > { %v1464_v7 = vpack.i.bf16 %v1837_v5, %v1840_v6  ;;  %540 = vst.msk [vmem:[#allocation2 + $0x48] sm:$0xff] %vm530_vm3, %v511_v4 }
 0x195   : > { %1465 = vrot.lane.b32.xlu1 %v1464_v7, %s1716_s10 }
 0x199   : > { %v503_v8 = vpop.permute.xlu1 %502  ;;  %v552_v9 = vld [vmem:[#allocation2 + $0x10] sm:$0xff] }
 0x19a   : > { %v1847_v10 = vsel %vm480_vm1, %v503_v8, %v505_v2  ;;  %534 = vst.msk [vmem:[#allocation2 + $0x18] sm:$0xff] %vm530_vm3, %v503_v8  ;;  %v1851_v11 = vpack.i.bf16 %v552_v9, %v1837_v5  ;;  %v1907_v30 = vld [vmem:[#allocation2 + $0x48] sm:$0xff] }
 0x19b   : > { %v1524_v21 = vpack.i.bf16 %v553_v17, %v1847_v10  ;;  %v1594_v31 = vpack.i.bf16 %v1907_v30, %v1847_v10 }
 0x19c   : > { %1480 = vrot.lane.b32.xlu0 %v1851_v11, %s1717_s11  ;;  %1490 = vrot.lane.b32.xlu2 %v1851_v11, %s1718_s12 }
 0x19d   : > { %1470 = vrot.lane.b32.xlu1 %v1464_v7, %s1719_s13 }
 0x1a1   : > { %v509_v12 = vpop.permute.xlu1 %508  ;;  %v507_v13 = vpop.permute.xlu0 %506  ;;  %v1858_v14 = vld [vmem:[#allocation2 + $0x18] sm:$0xff] }
 0x1a2   : > { %539 = vst.msk [vmem:[#allocation2 + $0x40] sm:$0xff] %vm480_vm1, %v509_v12  ;;  %v1862_v15 = vsel %vm480_vm1, %v507_v13, %v509_v12  ;;  %v1494_v16 = vpack.i.bf16 %v1858_v14, %v552_v9  ;;  %v1544_v22 = vpack.i.bf16 %v1847_v10, %v1858_v14 }
 0x1a3   : > { %537 = vst.msk [vmem:[#allocation2 + $0x30] sm:$0xff] %vm530_vm3, %v507_v13 }
 0x1a4   : > { %1485 = vrot.lane.b32.xlu0 %v1851_v11, %s1720_s15  ;;  %1495 = vrot.lane.b32.xlu2 %v1494_v16, %s1716_s10 }
 0x1a5   : > { %1475 = vrot.lane.b32.xlu1 %v1464_v7, %s1721_s16 }
 0x1a9   : > { %v513_v18 = vpop.permute.xlu0 %512  ;;  %v554_v25 = vld [vmem:[#allocation2 + $0x40] sm:$0xff] }
 0x1aa   : > { %v1871_v19 = vsel %vm480_vm1, %v511_v4, %v513_v18  ;;  %542 = vst.msk [vmem:[#allocation2 + $0x58] sm:$0xff] %vm480_vm1, %v513_v18  ;;  %v1888_v23 = vld [vmem:[#allocation2 + $0x30] sm:$0xff]  ;;  %v1564_v26 = vpack.i.bf16 %v554_v25, %v1862_v15  ;;  %v1549_v27 = vpack.i.bf16 %v553_v17, %v554_v25  ;;  %v1584_v32 = vpack.i.bf16 %v1907_v30, %v554_v25 }
 0x1ab   : > { %v1554_v24 = vpack.i.bf16 %v1862_v15, %v1888_v23  ;;  %v1654_v34 = vpack.i.bf16 %v1871_v19, %v1907_v30 }
 0x1ac   : > { %1510 = vrot.lane.b32.xlu0 %v1875_v20, %s1717_s11  ;;  %1500 = vrot.lane.b32.xlu2 %v1494_v16, %s1719_s13 }
 0x1ad   : > { %1515 = vrot.lane.b32.xlu1 %v1875_v20, %s1720_s15 }
 0x1b1   : > { %v555_v28 = vld [vmem:[#allocation2 + $0x58] sm:$0xff] }
 0x1b2   : > { %v1614_v29 = vpack.i.bf16 %v1888_v23, %v555_v28  ;;  %v1619_v33 = vpack.i.bf16 %v555_v28, %v1871_v19 }
 0x1b4   : > { %1525 = vrot.lane.b32.xlu0 %v1524_v21, %s1716_s10  ;;  %1505 = vrot.lane.b32.xlu2 %v1494_v16, %s1721_s16 }
 0x1b5   : > { %1545 = vrot.lane.b32.xlu1 %v1544_v22, %s1718_s12 }
 0x1bc   : > { %1530 = vrot.lane.b32.xlu0 %v1524_v21, %s1719_s13  ;;  %1520 = vrot.lane.b32.xlu2 %v1875_v20, %s1718_s12 }
 0x1bd   : > { %1555 = vrot.lane.b32.xlu1 %v1554_v24, %s1716_s10 }
 0x1c4   : > { %1540 = vrot.lane.b32.xlu0 %v1544_v22, %s1720_s15  ;;  %1535 = vrot.lane.b32.xlu2 %v1544_v22, %s1717_s11 }
 0x1c5   : > { %1560 = vrot.lane.b32.xlu1 %v1554_v24, %s1719_s13 }
 0x1cc   : > { %1565 = vrot.lane.b32.xlu0 %v1564_v26, %s1717_s11  ;;  %1550 = vrot.lane.b32.xlu2 %v1549_v27, %s1721_s16 }
 0x1cd   : > { %1570 = vrot.lane.b32.xlu1 %v1554_v24, %s1721_s16 }
 0x1d4   : > { %1575 = vrot.lane.b32.xlu0 %v1564_v26, %s1720_s15  ;;  %1580 = vrot.lane.b32.xlu2 %v1564_v26, %s1718_s12 }
 0x1d5   : > { %1615 = vrot.lane.b32.xlu1 %v1614_v29, %s1722_s17 }
 0x1dc   : > { %1595 = vrot.lane.b32.xlu0 %v1594_v31, %s1721_s16  ;;  %1585 = vrot.lane.b32.xlu2 %v1584_v32, %s1716_s10 }
 0x1dd   : > { %1645 = vrot.lane.b32.xlu1 %v1875_v20, %s1722_s17 }
 0x1e4   : > { %1590 = vrot.lane.b32.xlu2 %v1584_v32, %s1719_s13  ;;  %1620 = vrot.lane.b32.xlu0 %v1619_v33, %s1716_s10 }
 0x1e5   : > { %1655 = vrot.lane.b32.xlu1 %v1654_v34, %s1717_s11 }
 0x1ec   : > { %1600 = vrot.lane.b32.xlu2 %v1614_v29, %s1717_s11  ;;  %1625 = vrot.lane.b32.xlu0 %v1564_v26, %s1722_s17 }
 0x1ed   : > { %1660 = vrot.lane.b32.xlu1 %v1619_v33, %s1721_s16 }
 0x1f4   : > { %1605 = vrot.lane.b32.xlu2 %v1614_v29, %s1720_s15  ;;  %1635 = vrot.lane.b32.xlu0 %v1619_v33, %s1719_s13 }
 0x1f5   : > { %1665 = vrot.lane.b32.xlu1 %v1654_v34, %s1720_s15 }
 0x1f6   : > { %v1928_v35 = vpop.permute.xlu2 %1490 }
 0x1f7   : > { %v2245_v50 = vunpack.i.l.bf16 %v1928_v35 }
 0x1fc   : > { %1610 = vrot.lane.b32.xlu2 %v1614_v29, %s1718_s12  ;;  %1640 = vrot.lane.b32.xlu0 %v1544_v22, %s1722_s17 }
 0x1fd   : > { %1670 = vrot.lane.b32.xlu1 %v1654_v34, %s1718_s12 }
 0x1fe   : > { %v1933_v36 = vpop.permute.xlu2 %1495 }
 0x1ff   : > { %v1497_v39 = vunpack.i.l.bf16 %v1933_v36 }
 0x204   : > { %1630 = vrot.lane.b32.xlu2 %v1614_v29, %s1723_s18  ;;  %1675 = vrot.lane.b32.xlu0 %v1654_v34, %s1722_s17 }
 0x205   : > { %1685 = vrot.lane.b32.xlu1 %v1654_v34, %s1723_s18 }
 0x206   : > { %v1936_v37 = vpop.permute.xlu2 %1500 }
 0x207   : > { %v1938_v38 = vpop.permute.xlu1 %1465  ;;  %v1502_v45 = vunpack.i.l.bf16 %v1936_v37 }
 0x208   : > { %v1468_v40 = vunpack.i.h.bf16 %v1938_v38 }
 0x20a   : > { %v1945_v41 = vsel %vm594_vm4, %v1468_v40, %v1497_v39 }
 0x20c   : > { %1650 = vrot.lane.b32.xlu2 %v1564_v26, %s1723_s18  ;;  %1680 = vrot.lane.b32.xlu0 %v1851_v11, %s1722_s17 }
 0x20d   : > { %1690 = vrot.lane.b32.xlu1 %v1544_v22, %s1723_s18 }
 0x20e   : > { %v1949_v42 = vpop.permute.xlu0 %1480  ;;  %v1951_v43 = vpop.permute.xlu2 %1505 }
 0x20f   : > { %v1953_v44 = vpop.permute.xlu1 %1470  ;;  %v1507_v53 = vunpack.i.l.bf16 %v1951_v43  ;;  %v2250_v59 = vunpack.i.l.bf16 %v1949_v42 }
 0x210   : > { %v2249_v46 = vunpack.i.h.bf16 %v1953_v44 }
 0x212   : > { %v1960_v47 = vsel %vm724_vm5, %v2249_v46, %v1502_v45 }
 0x214   : > { %1695 = vrot.lane.b32.xlu2 %v1875_v20, %s1723_s18  ;;  %1700 = vrot.lane.b32.xlu0 %v1851_v11, %s1723_s18 }
 0x216   : > { %v1964_v48 = vpop.permute.xlu0 %1485  ;;  %v1521_v49 = vpop.permute.xlu2 %1520 }
 0x217   : > { %v1523_v51 = vunpack.i.h.bf16 %v1521_v49  ;;  %v1967_v52 = vpop.permute.xlu1 %1475  ;;  %v2248_v62 = vunpack.i.l.bf16 %v1964_v48  ;;  %v1522_v7 = vunpack.i.l.bf16 %v1521_v49 }
 0x218   : > { %v2247_v54 = vunpack.i.h.bf16 %v1967_v52 }
 0x219   : > { %v1974_v55 = vsel %vm994_vm7, %v1523_v51, %v2245_v50 }
 0x21a   : > { %v1979_v56 = vsel %vm824_vm6, %v2247_v54, %v1507_v53 }
 0x21e   : > { %v1981_v57 = vpop.permute.xlu0 %1510  ;;  %v1983_v58 = vpop.permute.xlu2 %1535 }
 0x21f   : > { %v1513_v60 = vunpack.i.h.bf16 %v1981_v57  ;;  %v1987_v61 = vpop.permute.xlu1 %1515  ;;  %v1512_v29 = vunpack.i.l.bf16 %v1981_v57 }
 0x220   : > { %v1518_v63 = vunpack.i.h.bf16 %v1987_v61 }
 0x221   : > { %v1994_v0 = vsel %vm908_vm8, %v1513_v60, %v2250_v59  ;;  %v1537_v59 = vunpack.i.l.bf16 %v1983_v58 }
 0x222   : > { %v1999_v1 = vsel %vm1086_vm9, %v1518_v63, %v2248_v62 }
 0x226   : > { %v1526_v2 = vpop.permute.xlu0 %1525  ;;  %v2001_v3 = vpop.permute.xlu2 %1550 }
 0x227   : > { %v2003_v4 = vpop.permute.xlu1 %1545  ;;  %v1528_v62 = vunpack.i.h.bf16 %v1526_v2  ;;  %v1527_v46 = vunpack.i.l.bf16 %v1526_v2 }
 0x228   : > { %v2246_v8 = vunpack.i.h.bf16 %v2003_v4 }
 0x22a   : > { %v2009_v9 = vsel %vm994_vm7, %v2246_v8, %v1522_v7 }
 0x22e   : > { %v2011_v11 = vpop.permute.xlu0 %1530  ;;  %v2013_v12 = vpop.permute.xlu2 %1580 }
 0x22f   : > { %v1556_v13 = vpop.permute.xlu1 %1555 }
 0x230   : > { %v1558_v31 = vunpack.i.h.bf16 %v1556_v13  ;;  %v1557_v32 = vunpack.i.l.bf16 %v1556_v13 }
 0x232   : > { %v599_v2 = vsel %vm594_vm4, %v1557_v32, %v1558_v31 }
 0x236   : > { %v2015_v16 = vpop.permute.xlu0 %1540  ;;  %v1586_v18 = vpop.permute.xlu2 %1585 }
 0x237   : > { %v2017_v17 = vpop.permute.xlu1 %1560  ;;  %v1588_v33 = vunpack.i.h.bf16 %v1586_v18  ;;  %v1587_v34 = vunpack.i.l.bf16 %v1586_v18  ;;  %v1538_v18 = vunpack.i.h.bf16 %v1983_v58 }
 0x239   : > { %v911_v32 = vsel %vm908_vm8, %v1537_v59, %v1538_v18  ;;  %v1415_v59 = vld [vmem:[%s2242_s5 + $0x8] sm:$0xff] }
 0x23e   : > { %v1566_v20 = vpop.permute.xlu0 %1565  ;;  %v2021_v22 = vpop.permute.xlu2 %1590 }
 0x23f   : > { %v2019_v21 = vpop.permute.xlu1 %1570  ;;  %v1568_v49 = vunpack.i.h.bf16 %v1566_v20  ;;  %v1567_v51 = vunpack.i.l.bf16 %v1566_v20 }
 0x246   : > { %v2023_v24 = vpop.permute.xlu0 %1575  ;;  %v1601_v26 = vpop.permute.xlu2 %1600 }
 0x247   : > { %v2025_v25 = vpop.permute.xlu1 %1615  ;;  %v1603_v7 = vunpack.i.h.bf16 %v1601_v26  ;;  %v1602_v50 = vunpack.i.l.bf16 %v1601_v26  ;;  %v1498_v26 = vunpack.i.h.bf16 %v1933_v36  ;;  %v1483_v36 = vunpack.i.h.bf16 %v1949_v42 }
 0x249   : > { %v913_v58 = vsel %vm908_vm8, %v1603_v7, %v1567_v51 }
 0x24e   : > { %v2027_v27 = vpop.permute.xlu0 %1595  ;;  %v2032_v39 = vpop.permute.xlu2 %1605 }
 0x24f   : > { %v2029_v28 = vpop.permute.xlu1 %1645  ;;  %v1608_v7 = vunpack.i.h.bf16 %v2032_v39 }
 0x256   : > { %v1621_v45 = vpop.permute.xlu0 %1620 }
 0x257   : > { %v1623_v53 = vunpack.i.h.bf16 %v1621_v45  ;;  %v1622_v60 = vunpack.i.l.bf16 %v1621_v45  ;;  %v1656_v63 = vpop.permute.xlu1 %1655 }
 0x258   : > { %v1658_v8 = vunpack.i.h.bf16 %v1656_v63  ;;  %v1657_v54 = vunpack.i.l.bf16 %v1656_v63  ;;  %v1467_v63 = vunpack.i.l.bf16 %v1938_v38  ;;  %v2251_v38 = vunpack.i.l.bf16 %v1949_v42 }
 0x259   : > { %v601_v57 = vsel %vm594_vm4, %v1588_v33, %v1622_v60  ;;  %v602_v13 = vsel %vm594_vm4, %v1622_v60, %v1623_v53  ;;  %v600_v33 = vsel %vm594_vm4, %v1558_v31, %v1587_v34  ;;  %v914_v53 = vsel %vm908_vm8, %v1567_v51, %v1568_v49  ;;  %v1407_v31 = vld [vmem:[%s2242_s5 + $0x18] sm:$0xff]  ;;  %v2061_v49 = vpop.permute.xlu2 %1610 }
 0x25a   : > { %627 = vmatpush.msrb.mxu0 %v601_v57  ;;  %647 = vmatpush.msrb.mxu1 %v602_v13  ;;  %v915_v20 = vsel %vm908_vm8, %v1657_v54, %v1658_v8  ;;  %v916_v45 = vsel %vm908_vm8, %v1658_v8, %v1602_v50  ;;  %v597_v54 = vsel %vm594_vm4, %v1498_v26, %v1527_v46  ;;  %v1592_v42 = vunpack.i.l.bf16 %v2021_v22 }
 0x25b   : > { %940 = vmatpush.msrb.mxu2 %v915_v20  ;;  %960 = vmatpush.msrb.mxu3 %v916_v45  ;;  %v598_v50 = vsel %vm594_vm4, %v1527_v46, %v1528_v62  ;;  %v912_v34 = vsel %vm908_vm8, %v1538_v18, %v1512_v29  ;;  %v595_v46 = vsel %vm594_vm4, %v1467_v63, %v1468_v40  ;;  %v1577_v29 = vunpack.i.l.bf16 %v2023_v24 }
 0x25c   : > { %628 = vmatpush.msrb.mxu0 %v599_v2  ;;  %648 = vmatpush.msrb.mxu1 %v600_v33  ;;  %v910_v40 = vsel %vm908_vm8, %v2251_v38, %v1483_v36  ;;  %v1533_v57 = vunpack.i.h.bf16 %v2011_v11  ;;  %v1532_v13 = vunpack.i.l.bf16 %v2011_v11  ;;  %v1503_v45 = vunpack.i.h.bf16 %v1936_v37 }
 0x25d   : > { %941 = vmatpush.msrb.mxu2 %v913_v58  ;;  %961 = vmatpush.msrb.mxu3 %v914_v53  ;;  %v1472_v26 = vunpack.i.l.bf16 %v1953_v44  ;;  %v1091_v33 = vsel %vm1086_vm9, %v1608_v7, %v1577_v29  ;;  %v1488_v36 = vunpack.i.h.bf16 %v1964_v48  ;;  %v1598_v38 = vunpack.i.h.bf16 %v2027_v27 }
 0x25e   : > { %v2049_v8 = vpop.permute.xlu0 %1625  ;;  %629 = vmatpush.msrb.mxu0 %v597_v54  ;;  %649 = vmatpush.msrb.mxu1 %v598_v50  ;;  %v727_v54 = vsel %vm724_vm5, %v1503_v45, %v1532_v13  ;;  %v728_v50 = vsel %vm724_vm5, %v1532_v13, %v1533_v57  ;;  %v1493_v7 = vunpack.i.h.bf16 %v1928_v35  ;;  %v2254_v57 = vunpack.i.h.bf16 %v1967_v52 }
 0x25f   : > { %v2059_v62 = vpop.permute.xlu1 %1660  ;;  %942 = vmatpush.msrb.mxu2 %v911_v32  ;;  %962 = vmatpush.msrb.mxu3 %v912_v34  ;;  %v1627_v45 = vunpack.i.l.bf16 %v2049_v8 }
 0x260   : > { %630 = vmatpush.msrb.mxu0 %v595_v46  ;;  %650 = vmatpush.msrb.mxu1 %v1945_v41  ;;  %v1593_v41 = vunpack.i.h.bf16 %v2021_v22  ;;  %v1607_v22 = vunpack.i.l.bf16 %v2032_v39  ;;  %v1543_v39 = vunpack.i.h.bf16 %v2015_v16  ;;  %v1663_v53 = vunpack.i.h.bf16 %v2059_v62 }
 0x261   : > { %1408 = vmatmul.msk.f32.vlgmr.msrb.gmra.mxu0 %vm611_vm10, %v1407_v31  ;;  %1409 = vmatmul.msk.f32.vlgmr.msrb.gmra.mxu1 %vm611_vm10, %v1407_v31  ;;  %v2102_v20 = vpop.permute.xlu2 %1630  ;;  %v1662_v37 = vunpack.i.l.bf16 %v2059_v62  ;;  %v1573_v46 = vunpack.i.h.bf16 %v2019_v21  ;;  %v1572_v62 = vunpack.i.l.bf16 %v2019_v21 }
 0x262   : > { %670 = vmatpush.msra.mxu0 %v1907_v30  ;;  %690 = vmatpush.msra.mxu1 %v1871_v19  ;;  %v1563_v19 = vunpack.i.h.bf16 %v2017_v17  ;;  %v1562_v30 = vunpack.i.l.bf16 %v2017_v17 }
 0x263   : > { %943 = vmatpush.msrb.mxu2 %v1994_v0  ;;  %963 = vmatpush.msrb.mxu3 %v910_v40  ;;  %v2252_v40 = vunpack.i.h.bf16 %v1953_v44  ;;  %v831_v21 = vsel %vm824_vm6, %v1598_v38, %v1662_v37  ;;  %v832_v44 = vsel %vm824_vm6, %v1662_v37, %v1663_v53 }
 0x264   : > { %671 = vmatpush.msra.mxu0 %v1888_v23  ;;  %691 = vmatpush.msra.mxu1 %v1862_v15  ;;  %v551_v15 = vld [vmem:[%s2242_s5] sm:$0xff]  ;;  %v1578_v23 = vunpack.i.h.bf16 %v2023_v24  ;;  %v729_v63 = vsel %vm724_vm5, %v1562_v30, %v1563_v19  ;;  %v730_v2 = vsel %vm724_vm5, %v1563_v19, %v1592_v42  ;;  %v1552_v30 = vunpack.i.l.bf16 %v2001_v3 }
 0x265   : > { %1419 = vmatmul.msk.f32.vlgmr.msrb.gmra.mxu2 %vm611_vm10, %v1415_v59  ;;  %1420 = vmatmul.msk.f32.vlgmr.msrb.gmra.mxu3 %vm611_vm10, %v1415_v59  ;;  %v725_v59 = vsel %vm724_vm5, %v1472_v26, %v2252_v40  ;;  %v1477_v42 = vunpack.i.l.bf16 %v1967_v52  ;;  %v1547_v26 = vunpack.i.l.bf16 %v2003_v4 }
 0x266   : > { %672 = vmatpush.msra.mxu0 %v1858_v14  ;;  %692 = vmatpush.msra.mxu1 %v1847_v10  ;;  %v1636_v0 = vpop.permute.xlu0 %1635  ;;  %v1092_v58 = vsel %vm1086_vm9, %v1577_v29, %v1578_v23  ;;  %v1553_v23 = vunpack.i.h.bf16 %v2001_v3  ;;  %v829_v29 = vsel %vm824_vm6, %v1572_v62, %v1573_v46  ;;  %v1583_v3 = vunpack.i.h.bf16 %v2013_v12 }
 0x267   : > { %v1638_v51 = vunpack.i.h.bf16 %v1636_v0  ;;  %v1637_v60 = vunpack.i.l.bf16 %v1636_v0  ;;  %v1666_v17 = vpop.permute.xlu1 %1665  ;;  %v2253_v0 = vunpack.i.l.bf16 %v1964_v48  ;;  %v825_v13 = vsel %vm824_vm6, %v1477_v42, %v2254_v57 }
 0x268   : > { %673 = vmatpush.msra.mxu0 %v1840_v6  ;;  %693 = vmatpush.msra.mxu1 %v1837_v5  ;;  %v1668_v10 = vunpack.i.h.bf16 %v1666_v17  ;;  %v1667_v14 = vunpack.i.l.bf16 %v1666_v17  ;;  %v1542_v6 = vunpack.i.l.bf16 %v2015_v16  ;;  %v1517_v16 = vunpack.i.l.bf16 %v1987_v61  ;;  %v1412_v61 = vld [vmem:[%s2242_s5 + $0x30] sm:$0xff] }
 0x269   : > { %1410 = vmatmul.msk.f32.vlgmr.msra.gmra.mxu0 %vm611_vm10, %v551_v15  ;;  %1411 = vmatmul.msk.f32.vlgmr.msra.gmra.mxu1 %vm611_vm10, %v551_v15  ;;  %v731_v24 = vsel %vm724_vm5, %v1593_v41, %v1637_v60  ;;  %v732_v18 = vsel %vm724_vm5, %v1637_v60, %v1638_v51  ;;  %v1597_v41 = vunpack.i.l.bf16 %v2027_v27  ;;  %v1425_v27 = vld [vmem:[%s2242_s5 + $0x28] sm:$0xff]  ;;  %v1508_v15 = vunpack.i.h.bf16 %v1951_v43  ;;  %v2150_v60 = vpop.permute.xlu2 %1650 }
 0x26a   : > { %756 = vmatpush.msrb.mxu0 %v731_v24  ;;  %776 = vmatpush.msrb.mxu1 %v732_v18  ;;  %v1093_v5 = vsel %vm1086_vm9, %v1667_v14, %v1668_v10  ;;  %v1094_v11 = vsel %vm1086_vm9, %v1668_v10, %v1607_v22  ;;  %v1089_v32 = vsel %vm1086_vm9, %v1542_v6, %v1543_v39  ;;  %v1617_v10 = vunpack.i.l.bf16 %v2025_v25  ;;  %v1416_v24 = vld [vmem:[%s2242_s5 + $0x20] sm:$0xff] }
 0x26b   : > { %1118 = vmatpush.msra.mxu2 %v1093_v5  ;;  %1138 = vmatpush.msra.mxu3 %v1094_v11  ;;  %v1090_v34 = vsel %vm1086_vm9, %v1543_v39, %v1517_v16  ;;  %v830_v51 = vsel %vm824_vm6, %v1573_v46, %v1552_v30  ;;  %v827_v22 = vsel %vm824_vm6, %v1508_v15, %v1597_v41  ;;  %v1613_v18 = vunpack.i.h.bf16 %v2061_v49 }
 0x26c   : > { %757 = vmatpush.msrb.mxu0 %v729_v63  ;;  %777 = vmatpush.msrb.mxu1 %v730_v2  ;;  %v828_v43 = vsel %vm824_vm6, %v1597_v41, %v1553_v23  ;;  %v1612_v39 = vunpack.i.l.bf16 %v2061_v49  ;;  %v1628_v11 = vunpack.i.h.bf16 %v2049_v8  ;;  %v1618_v8 = vunpack.i.h.bf16 %v2025_v25 }
 0x26d   : > { %1119 = vmatpush.msra.mxu2 %v1091_v33  ;;  %1139 = vmatpush.msra.mxu3 %v1092_v58  ;;  %v1647_v33 = vunpack.i.l.bf16 %v2029_v28  ;;  %v1652_v46 = vunpack.i.l.bf16 %v2150_v60 }
 0x26e   : > { %v2118_v31 = vpop.permute.xlu0 %1640  ;;  %758 = vmatpush.msrb.mxu0 %v727_v54  ;;  %778 = vmatpush.msrb.mxu1 %v728_v50  ;;  %v1261_v37 = vsel %vm1256_vm11, %v1618_v8, %v1627_v45  ;;  %v1262_v25 = vsel %vm1256_vm11, %v1627_v45, %v1628_v11 }
 0x26f   : > { %v1671_v19 = vpop.permute.xlu1 %1670  ;;  %1120 = vmatpush.msra.mxu2 %v1089_v32  ;;  %1140 = vmatpush.msra.mxu3 %v1090_v34  ;;  %v1643_v16 = vunpack.i.h.bf16 %v2118_v31  ;;  %v1648_v34 = vunpack.i.h.bf16 %v2029_v28 }
 0x270   : > { %759 = vmatpush.msrb.mxu0 %v725_v59  ;;  %779 = vmatpush.msrb.mxu1 %v1960_v47  ;;  %v1088_v47 = vsel %vm1086_vm9, %v2253_v0, %v1488_v36  ;;  %v1673_v48 = vunpack.i.h.bf16 %v1671_v19  ;;  %v1672_v17 = vunpack.i.l.bf16 %v1671_v19  ;;  %v2255_v36 = vunpack.i.h.bf16 %v2003_v4 }
 0x271   : > { %1413 = vmatmul.msk.f32.vlgmr.msrb.gmra.mxu0 %vm611_vm10, %v1412_v61  ;;  %1414 = vmatmul.msk.f32.vlgmr.msrb.gmra.mxu1 %vm611_vm10, %v1412_v61  ;;  %v2256_v61 = vunpack.i.l.bf16 %v1928_v35  ;;  %v1696_v62 = vpop.permute.xlu2 %1695  ;;  %v1260_v4 = vsel %vm1256_vm11, %v1643_v16, %v1647_v33  ;;  %v1421_v35 = vld [vmem:[%s2242_s5 + $0x38] sm:$0xff]  ;;  %v1632_v59 = vunpack.i.l.bf16 %v2102_v20  ;;  %v1653_v19 = vunpack.i.h.bf16 %v2150_v60 }
 0x272   : > { %856 = vmatpush.msra.mxu0 %v831_v21  ;;  %876 = vmatpush.msra.mxu1 %v832_v44  ;;  %v1001_v52 = vsel %vm994_vm7, %v1672_v17, %v1673_v48  ;;  %v1002_v49 = vsel %vm994_vm7, %v1673_v48, %v1612_v39  ;;  %v1633_v21 = vunpack.i.h.bf16 %v2102_v20  ;;  %v1697_v0 = vunpack.i.l.bf16 %v1696_v62  ;;  %v1430_v20 = vld [vmem:[%s2242_s5 + $0x40] sm:$0xff] }
 0x273   : > { %1121 = vmatpush.msra.mxu2 %v1999_v1  ;;  %1141 = vmatpush.msra.mxu3 %v1088_v47  ;;  %v1582_v1 = vunpack.i.l.bf16 %v2013_v12  ;;  %v996_v32 = vsel %vm994_vm7, %v2256_v61, %v1493_v7  ;;  %v1176_v23 = vsel %vm1170_vm12, %v1652_v46, %v1653_v19  ;;  %v1698_v48 = vunpack.i.h.bf16 %v1696_v62 }
 0x274   : > { %857 = vmatpush.msra.mxu0 %v829_v29  ;;  %877 = vmatpush.msra.mxu1 %v830_v51 }
 0x275   : > { %1426 = vmatmul.msk.f32.vlgmr.msra.gmra.mxu2 %vm611_vm10, %v1425_v27  ;;  %1427 = vmatmul.msk.f32.vlgmr.msra.gmra.mxu3 %vm611_vm10, %v1425_v27  ;;  %v999_v58 = vsel %vm994_vm7, %v1613_v18, %v1582_v1  ;;  %v1000_v53 = vsel %vm994_vm7, %v1582_v1, %v1583_v3 }
 0x276   : > { %858 = vmatpush.msra.mxu0 %v827_v22  ;;  %878 = vmatpush.msra.mxu1 %v828_v43  ;;  %v1676_v14 = vpop.permute.xlu0 %1675  ;;  %v1424_v22 = vld [vmem:[%s2242_s5 + $0x10] sm:$0xff] }
 0x277   : > { %v1678_v6 = vunpack.i.h.bf16 %v1676_v14  ;;  %v1677_v5 = vunpack.i.l.bf16 %v1676_v14  ;;  %v1686_v12 = vpop.permute.xlu1 %1685 }
 0x278   : > { %859 = vmatpush.msra.mxu0 %v825_v13  ;;  %879 = vmatpush.msra.mxu1 %v1979_v56  ;;  %v1642_v56 = vunpack.i.l.bf16 %v2118_v31  ;;  %v1688_v54 = vunpack.i.h.bf16 %v1686_v12  ;;  %v1687_v50 = vunpack.i.l.bf16 %v1686_v12  ;;  %v997_v31 = vsel %vm994_vm7, %v1547_v26, %v2255_v36  ;;  %v786_v26 = vld [vmem:[%s2243_s6] ss:$2 sm:$0x3] }
 0x279   : > { %1417 = vmatmul.msk.f32.vlgmr.msra.gmra.mxu0 %vm611_vm10, %v1416_v24  ;;  %1418 = vmatmul.msk.f32.vlgmr.msra.gmra.mxu1 %vm611_vm10, %v1416_v24  ;;  %v1263_v63 = vsel %vm1256_vm11, %v1677_v5, %v1678_v6  ;;  %v1264_v2 = vsel %vm1256_vm11, %v1678_v6, %v1617_v10  ;;  %v788_v8 = vperm.slane %v786_v26, 0 }
 0x27a   : > { %1026 = vmatpush.msrb.mxu0 %v1001_v52  ;;  %1046 = vmatpush.msrb.mxu1 %v1002_v49  ;;  %v1259_v40 = vsel %vm1256_vm11, %v1642_v56, %v1643_v16  ;;  %v1178_v47 = vsel %vm1170_vm12, %v1688_v54, %v1632_v59  ;;  %v789_v16 = vperm.slane %v786_v26, 1 }
 0x27b   : > { %1288 = vmatpush.msrb.mxu2 %v1263_v63  ;;  %1308 = vmatpush.msrb.mxu3 %v1264_v2  ;;  %v1433_v2 = vld [vmem:[%s2243_s6 + $0x1] ss:$2 sm:$0x3] }
 0x27c   : > { %1027 = vmatpush.msrb.mxu0 %v999_v58  ;;  %1047 = vmatpush.msrb.mxu1 %v1000_v53 }
 0x27d   : > { %1289 = vmatpush.msrb.mxu2 %v1261_v37  ;;  %1309 = vmatpush.msrb.mxu3 %v1262_v25 }
 0x27e   : > { %v1681_v38 = vpop.permute.xlu0 %1680  ;;  %1028 = vmatpush.msrb.mxu0 %v997_v31  ;;  %1048 = vmatpush.msrb.mxu1 %v2009_v9  ;;  %v1177_v9 = vsel %vm1170_vm12, %v1687_v50, %v1688_v54  ;;  %v1321_v54 = vperm.slane %v1433_v2, 0  ;;  %v1322_v50 = vperm.slane %v1433_v2, 1 }
 0x27f   : > { %v1683_v28 = vunpack.i.h.bf16 %v1681_v38  ;;  %v1682_v30 = vunpack.i.l.bf16 %v1681_v38  ;;  %1290 = vmatpush.msrb.mxu2 %v1259_v40  ;;  %1310 = vmatpush.msrb.mxu3 %v1260_v4  ;;  %v1691_v41 = vpop.permute.xlu1 %1690 }
 0x280   : > { %1029 = vmatpush.msrb.mxu0 %v1974_v55  ;;  %1049 = vmatpush.msrb.mxu1 %v996_v32  ;;  %v1693_v44 = vunpack.i.h.bf16 %v1691_v41  ;;  %v1692_v42 = vunpack.i.l.bf16 %v1691_v41  ;;  %v1175_v55 = vsel %vm1170_vm12, %v1633_v21, %v1652_v46 }
 0x281   : > { %1422 = vmatmul.msk.f32.vlgmr.msrb.gmra.mxu0 %vm611_vm10, %v1421_v35  ;;  %1423 = vmatmul.msk.f32.vlgmr.msrb.gmra.mxu1 %vm611_vm10, %v1421_v35  ;;  %v1257_v27 = vsel %vm1256_vm11, %v1648_v34, %v1682_v30  ;;  %v1258_v15 = vsel %vm1256_vm11, %v1682_v30, %v1683_v28 }
 0x282   : > { %1202 = vmatpush.msra.mxu0 %v1177_v9  ;;  %1222 = vmatpush.msra.mxu1 %v1178_v47  ;;  %v1173_v29 = vsel %vm1170_vm12, %v1692_v42, %v1693_v44  ;;  %v1174_v51 = vsel %vm1170_vm12, %v1693_v44, %v1697_v0 }
 0x283   : > { %1291 = vmatpush.msrb.mxu2 %v1257_v27  ;;  %1311 = vmatpush.msrb.mxu3 %v1258_v15 }
 0x284   : > { %1203 = vmatpush.msra.mxu0 %v1175_v55  ;;  %1223 = vmatpush.msra.mxu1 %v1176_v23 }
 0x285   : > { %1431 = vmatmul.msk.f32.vlgmr.msrb.gmra.mxu2 %vm611_vm10, %v1430_v20  ;;  %1432 = vmatmul.msk.f32.vlgmr.msrb.gmra.mxu3 %vm611_vm10, %v1430_v20 }
 0x286   : > { %v1701_v60 = vpop.permute.xlu0 %1700  ;;  %1204 = vmatpush.msra.mxu0 %v1173_v29  ;;  %1224 = vmatpush.msra.mxu1 %v1174_v51 }
 0x287   : > { %v1703_v17 = vunpack.i.h.bf16 %v1701_v60  ;;  %v1702_v7 = vunpack.i.l.bf16 %v1701_v60 }
 0x289   : > { %v1171_v43 = vsel %vm1170_vm12, %v1698_v48, %v1702_v7  ;;  %v1172_v3 = vsel %vm1170_vm12, %v1702_v7, %v1703_v17 }
 0x28a   : > { %1205 = vmatpush.msra.mxu0 %v1171_v43  ;;  %1225 = vmatpush.msra.mxu1 %v1172_v3 }
 0x28b   : > { %1428 = vmatmul.msk.f32.vlgmr.msra.gmra.mxu0 %vm611_vm10, %v1424_v22  ;;  %1429 = vmatmul.msk.f32.vlgmr.msra.gmra.mxu1 %vm611_vm10, %v1424_v22 }
 0x2de   : > { %v632_v1 = vpop.f32.mrf.mxu0  ;;  %v652_v10 = vpop.f32.mrf.mxu1 }
 0x2e6   : > { %v675_v14 = vpop.f32.mrf.mxu0  ;;  %v695_v57 = vpop.f32.mrf.mxu1 }
 0x2e7   : > { %v676_v49 = vadd.f32 %v675_v14, %v632_v1  ;;  %v696_v63 = vadd.f32 %v695_v57, %v652_v10 }
 0x2e8   : > { %v945_v6 = vpop.f32.mrf.mxu2  ;;  %v965_v5 = vpop.f32.mrf.mxu3 }
 0x2ee   : > { %v761_v13 = vpop.f32.mrf.mxu0  ;;  %v781_v24 = vpop.f32.mrf.mxu1 }
 0x2ef   : > { %v784_v56 = vadd.f32 %v761_v13, %v676_v49  ;;  %v785_v33 = vadd.f32 %v781_v24, %v696_v63 }
 0x2f1   : > { %v792_v62 = vmul.f32 %v788_v8, %v784_v56  ;;  %v793_v38 = vmul.f32 %v789_v16, %v785_v33 }
 0x2f6   : > { %v861_v18 = vpop.f32.mrf.mxu0  ;;  %v881_v39 = vpop.f32.mrf.mxu1 }
 0x2f7   : > { %v946_v58 = vadd.f32 %v945_v6, %v861_v18  ;;  %v966_v53 = vadd.f32 %v965_v5, %v881_v39 }
 0x2f8   : > { %v1123_v12 = vpop.f32.mrf.mxu2  ;;  %v1143_v11 = vpop.f32.mrf.mxu3 }
 0x2fe   : > { %v1031_v45 = vpop.f32.mrf.mxu0  ;;  %v1051_v52 = vpop.f32.mrf.mxu1 }
 0x2ff   : > { %v1054_v36 = vadd.f32 %v1031_v45, %v946_v58  ;;  %v1055_v31 = vadd.f32 %v1051_v52, %v966_v53 }
 0x301   : > { %v1056_v35 = vadd.f32 %v1054_v36, %v792_v62  ;;  %v1057_v59 = vadd.f32 %v1055_v31, %v793_v38 }
 0x308   : > { %v1207_v37 = vpop.f32.mrf.mxu0  ;;  %v1227_v25 = vpop.f32.mrf.mxu1 }
 0x309   : > { %v1208_v61 = vadd.f32 %v1207_v37, %v1123_v12  ;;  %v1228_v32 = vadd.f32 %v1227_v25, %v1143_v11  ;;  %v1293_v34 = vpop.f32.mrf.mxu2  ;;  %v1313_v46 = vpop.f32.mrf.mxu3 }
 0x30b   : > { %v1316_v40 = vadd.f32 %v1293_v34, %v1208_v61  ;;  %v1317_v4 = vadd.f32 %v1313_v46, %v1228_v32 }
 0x30d   : > { %v1325_v19 = vmul.f32 %v1321_v54, %v1316_v40  ;;  %v1326_v28 = vmul.f32 %v1322_v50, %v1317_v4 }
 0x30f   : > { %v1327_v30 = vadd.f32 %v1325_v19, %v1056_v35  ;;  %v1328_v41 = vadd.f32 %v1326_v28, %v1057_v59 }
 0x311   : > { %1331 = vst [vmem:[%s1784_s14 + $0x10] sm:$0xff] %v1327_v30 }
 0x312   : > { %1332 = vst [vmem:[%s1784_s14 + $0x18] sm:$0xff] %v1328_v41 }
 0x313 PF: > { %s17_s24 = sadd.s32 1, %s1710_s24  }
 0x314   : > { %p14_p4 = scmp.ge.s32.totalorder %s17_s24, 4  }
 0x316   :  { %16 = sbr.rel (!%p14_p4) target bundleno = 1 (0x1), region = 87 }

</bundles_post_ra>
